<compile_context>
chip_gen: v7x
topology: tpu7x:2x2x1
jax: 0.10.0
libtpu: 0.0.40
codegen_flags: <defaults>
</compile_context>

<pallas_src>
import functools

import jax
import jax.numpy as jnp
from jax.experimental import pallas as pl
from jax.experimental.pallas import tpu as pltpu


_ACC_W = 512  # lane width of the running sum/max accumulators (multiple of 128)


def _fold_tile(x_ref, *, acc_w, nslabs, rem=None):
    """Fold the (nb, C, thw) input tile into (nb, C, acc_w) partial sum / max.

    rem is None for full tiles; for the (possibly partial) last tile it is the
    number of valid lanes, and lanes >= rem are masked to 0 (sum) / -inf (max).
    """
    p_sum = None
    p_max = None
    for j in range(nslabs):  # static unroll; each slab is consumed immediately
        slab = x_ref[:, :, pl.ds(j * acc_w, acc_w)].astype(jnp.float32)
        if rem is None:
            s_sum = slab
            s_max = slab
        else:
            lane = jax.lax.broadcasted_iota(jnp.int32, slab.shape, 2)
            valid = (j * acc_w + lane) < rem
            s_sum = jnp.where(valid, slab, 0.0)
            s_max = jnp.where(valid, slab, -jnp.inf)
        p_sum = s_sum if p_sum is None else p_sum + s_sum
        p_max = s_max if p_max is None else jnp.maximum(p_max, s_max)
    return p_sum, p_max


def _pool_fast_kernel(x_ref, avg_ref, max_ref, *, hw):
    """nk == 1 fast path: whole spatial extent in one tile, no scratch round-trip."""
    x = x_ref[...].astype(jnp.float32)                       # (nb, C, HW)
    avg_ref[...] = (jnp.sum(x, axis=2) * (1.0 / hw))[:, None, :]
    max_ref[...] = jnp.max(x, axis=2)[:, None, :]


def _pool_stream_kernel(x_ref, avg_ref, max_ref, sum_acc, max_acc, *,
                        hw, thw, acc_w, nk):
    """Streaming spatial reduction; accumulate over the innermost (spatial) axis."""
    k = pl.program_id(1)
    nslabs = thw // acc_w
    rem = hw - (nk - 1) * thw                 # valid lanes in the last tile
    last_rem = rem if (hw % thw) != 0 else None

    # NOTE: the init-at-k==0 / finalize-at-k==last pattern requires the spatial
    # reduction axis to stay innermost and "arbitrary" (never core-parallel).

    @pl.when(k == 0)
    def _init():                              # nk >= 2, so k == 0 is never last
        p_sum, p_max = _fold_tile(x_ref, acc_w=acc_w, nslabs=nslabs)
        sum_acc[...] = p_sum
        max_acc[...] = p_max

    @pl.when(jnp.logical_and(k > 0, k < nk - 1))
    def _accumulate():                        # unmasked hot path: pure VPU vadd/vmax
        p_sum, p_max = _fold_tile(x_ref, acc_w=acc_w, nslabs=nslabs)
        sum_acc[...] = sum_acc[...] + p_sum
        max_acc[...] = jnp.maximum(max_acc[...], p_max)

    @pl.when(k == nk - 1)
    def _finalize():                          # mask (if needed) only on the last tile
        p_sum, p_max = _fold_tile(x_ref, acc_w=acc_w, nslabs=nslabs, rem=last_rem)
        s = sum_acc[...] + p_sum
        m = jnp.maximum(max_acc[...], p_max)
        avg_ref[...] = (jnp.sum(s, axis=2) * (1.0 / hw))[:, None, :]
        max_ref[...] = jnp.max(m, axis=2)[:, None, :]


def _gate_kernel(avg_ref, max_ref, w1_ref, w2_ref, o_ref):
    """sigmoid(MLP(avg) + MLP(max)) for a (nbm, 1, C) chunk of pooled stats."""
    avg = avg_ref[...][:, 0, :]                               # (nbm, C)
    mx = max_ref[...][:, 0, :]
    stats = jnp.concatenate([avg, mx], axis=0)                # (2*nbm, C)

    w1 = w1_ref[...].astype(jnp.float32)                      # (Ch, C)
    w2 = w2_ref[...].astype(jnp.float32)                      # (C, Ch)

    h = jax.lax.dot_general(stats, w1, (((1,), (1,)), ((), ())),
                            preferred_element_type=jnp.float32)
    h = jnp.maximum(h, 0.0)                                   # ReLU
    y = jax.lax.dot_general(h, w2, (((1,), (1,)), ((), ())),
                            preferred_element_type=jnp.float32)

    nbm = avg.shape[0]
    gate = jax.nn.sigmoid(y[:nbm] + y[nbm:])                  # (nbm, C)
    o_ref[...] = gate[:, None, :].astype(o_ref.dtype)


def _pick_nb(n, c):
    # Several batch rows per step amortize the ~0.35us/step overhead; shrink nb
    # as C grows so (nb, C, 512) accumulators and (nb, C, thw) tiles stay small.
    return max(1, min(n, 16, max(1, 2048 // max(c, 1))))


def channel_attention(x, w1, w2, *, max_x_tile_bytes=8 * 1024 * 1024,
                      batch_block=None):
    """x: (N, C, H, W); w1: (C//ratio, C); w2: (C, C//ratio) -> (N, C, 1, 1) x.dtype."""
    N, C, H, W = x.shape
    Ch = w1.shape[0]
    assert w1.shape == (Ch, C) and w2.shape == (C, Ch)
    HW = H * W
    itemsize = jnp.dtype(x.dtype).itemsize

    nb = batch_block if batch_block is not None else _pick_nb(N, C)
    nb = max(1, min(nb, N))
    grid_b = pl.cdiv(N, nb)              # non-divisor N handled by Pallas edge blocks

    # Spatial tile: full HW if it fits the per-buffer budget, else a multiple of
    # _ACC_W lanes, never below 512 lanes (measured HBM-roofline sweet spot).
    lanes_budget = max(_ACC_W, max_x_tile_bytes // max(1, nb * C * itemsize))
    if HW <= lanes_budget:
        thw, nk = HW, 1
    else:
        thw = (lanes_budget // _ACC_W) * _ACC_W
        nk = pl.cdiv(HW, thw)
    acc_w = min(_ACC_W, thw)

    x_flat = x.reshape(N, C, HW)         # keep native dtype; upcast inside kernel

    # Explicit VMEM sizing: double-buffered x tiles + narrow accumulators + outputs.
    acc_bytes = 0 if nk == 1 else 2 * 4 * nb * C * acc_w
    vmem_need = 2 * nb * C * thw * itemsize + acc_bytes + 4 * 4 * nb * C + (1 << 20)
    vmem_limit = int(min(max(vmem_need, 32 * 1024 * 1024), 56 * 1024 * 1024))

    out_shapes = (jax.ShapeDtypeStruct((N, 1, C), jnp.float32),
                  jax.ShapeDtypeStruct((N, 1, C), jnp.float32))
    cost = pl.CostEstimate(
        flops=int(2 * N * C * HW),
        transcendentals=0,
        bytes_accessed=int(N * C * HW * itemsize + 2 * N * C * 4),
    )

    if nk == 1:
        avg, mx = pl.pallas_call(
            functools.partial(_pool_fast_kernel, hw=HW),
            out_shape=out_shapes,
            grid_spec=pltpu.PrefetchScalarGridSpec(
                num_scalar_prefetch=0,
                grid=(grid_b,),
                in_specs=[pl.BlockSpec((nb, C, HW), lambda b: (b, 0, 0))],
                out_specs=[pl.BlockSpec((nb, 1, C), lambda b: (b, 0, 0)),
                           pl.BlockSpec((nb, 1, C), lambda b: (b, 0, 0))],
            ),
            compiler_params=pltpu.CompilerParams(
                dimension_semantics=("parallel",),
                vmem_limit_bytes=vmem_limit,
            ),
            cost_estimate=cost,
        )(x_flat)
    else:
        avg, mx = pl.pallas_call(
            functools.partial(_pool_stream_kernel, hw=HW, thw=thw,
                              acc_w=acc_w, nk=nk),
            out_shape=out_shapes,
            grid_spec=pltpu.PrefetchScalarGridSpec(
                num_scalar_prefetch=0,
                grid=(grid_b, nk),
                in_specs=[pl.BlockSpec((nb, C, thw), lambda b, k: (b, 0, k))],
                out_specs=[pl.BlockSpec((nb, 1, C), lambda b, k: (b, 0, 0)),
                           pl.BlockSpec((nb, 1, C), lambda b, k: (b, 0, 0))],
                scratch_shapes=[pltpu.VMEM((nb, C, acc_w), jnp.float32),
                                pltpu.VMEM((nb, C, acc_w), jnp.float32)],
            ),
            # On v7x the batch axis could use pltpu.CORE_PARALLEL (2 TCs); kept
            # "parallel" here for portability across v5e/v6e/v7x.
            compiler_params=pltpu.CompilerParams(
                dimension_semantics=("parallel", "arbitrary"),
                vmem_limit_bytes=vmem_limit,
            ),
            cost_estimate=cost,
        )(x_flat)

    # Tiny batched C -> C//16 -> C MLP + sigmoid over all pooled stats at once.
    nbm = min(N, 256)
    gate = pl.pallas_call(
        _gate_kernel,
        out_shape=jax.ShapeDtypeStruct((N, 1, C), x.dtype),
        grid_spec=pltpu.PrefetchScalarGridSpec(
            num_scalar_prefetch=0,
            grid=(pl.cdiv(N, nbm),),
            in_specs=[pl.BlockSpec((nbm, 1, C), lambda b: (b, 0, 0)),
                      pl.BlockSpec((nbm, 1, C), lambda b: (b, 0, 0)),
                      pl.BlockSpec((Ch, C), lambda b: (0, 0)),
                      pl.BlockSpec((C, Ch), lambda b: (0, 0))],
            out_specs=pl.BlockSpec((nbm, 1, C), lambda b: (b, 0, 0)),
        ),
        compiler_params=pltpu.CompilerParams(
            dimension_semantics=("parallel",),
        ),
        cost_estimate=pl.CostEstimate(
            flops=int(8 * N * C * Ch),
            transcendentals=int(N * C),
            bytes_accessed=int(2 * N * C * 4 + 2 * C * Ch * 4 + N * C * itemsize),
        ),
    )(avg, mx, w1, w2)

    return gate.reshape(N, C, 1, 1)


def _reference(x, w1, w2):
    # Pure-JAX reference of the PyTorch forward.
    xf = x.astype(jnp.float32)
    avg = jnp.mean(xf, axis=(2, 3))                # (N, C)
    mx = jnp.max(xf, axis=(2, 3))                  # (N, C)
    w1f = w1.astype(jnp.float32)
    w2f = w2.astype(jnp.float32)

    def mlp(v):                                    # v: (N, C)
        return jnp.maximum(v @ w1f.T, 0.0) @ w2f.T

    out = jax.nn.sigmoid(mlp(avg) + mlp(mx))       # (N, C)
    return out[:, :, None, None].astype(x.dtype)


if __name__ == "__main__":
    key = jax.random.PRNGKey(0)
    kx, k1, k2, kx2 = jax.random.split(key, 4)

    # in_planes=32, ratio=16 -> hidden = 2 ; small spatial 16x16 ; batch 2
    N, C, H, W = 2, 32, 16, 16
    Ch = C // 16

    x = jax.random.normal(kx, (N, C, H, W), dtype=jnp.float32)
    # Bias-free 1x1 conv weights, Conv2d (out, in, 1, 1) squeezed to (out, in).
    w1 = jax.random.normal(k1, (Ch, C), dtype=jnp.float32) * (1.0 / jnp.sqrt(C))
    w2 = jax.random.normal(k2, (C, Ch), dtype=jnp.float32) * (1.0 / jnp.sqrt(Ch))

    out = jax.block_until_ready(channel_attention(x, w1, w2))
    ref = _reference(x, w1, w2)
    assert out.shape == (N, C, 1, 1)
    assert jnp.allclose(out, ref, atol=1e-5, rtol=1e-5), "fast-path mismatch"

    # Also exercise the multi-tile streaming path (partial last spatial tile)
    # and a non-divisor batch (partial last batch block).
    N2, H2, W2 = 5, 40, 40
    x2 = jax.random.normal(kx2, (N2, C, H2, W2), dtype=jnp.float32)
    out2 = jax.block_until_ready(
        channel_attention(x2, w1, w2, max_x_tile_bytes=64 * 1024, batch_block=2))
    ref2 = _reference(x2, w1, w2)
    assert out2.shape == (N2, C, 1, 1)
    assert jnp.allclose(out2, ref2, atol=1e-5, rtol=1e-5), "stream-path mismatch"

    print("KERNEL_OK")
</pallas_src>

<mosaic_0001>
module attributes {stable_mosaic.version = 11 : i64} {
  func.func @_pool_fast_kernel(%arg0: i32, %arg1: memref<2x32x256xf32, #tpu.memory_space<vmem>>, %arg2: memref<2x1x32xf32, #tpu.memory_space<vmem>>, %arg3: memref<2x1x32xf32, #tpu.memory_space<vmem>>) attributes {dimension_semantics = [#tpu.dimension_semantics<parallel>], iteration_bounds = array<i64: 1>, scalar_prefetch = 0 : i64, scratch_operands = 0 : i64, tpu.core_type = #tpu.core_type<tc>, window_params = [{transform_indices = @transform_0, window_bounds = array<i64: 2, 32, 256>}, {transform_indices = @transform_1, window_bounds = array<i64: 2, 1, 32>}, {transform_indices = @transform_2, window_bounds = array<i64: 2, 1, 32>}]} {
    %c0 = arith.constant 0 : index
    %c0_0 = arith.constant 0 : index
    %c0_1 = arith.constant 0 : index
    %0 = vector.load %arg1[%c0, %c0_0, %c0_1] : memref<2x32x256xf32, #tpu.memory_space<vmem>>, vector<2x32x256xf32>
    %cst = arith.constant dense<0.000000e+00> : vector<2x32xf32>
    %1 = vector.multi_reduction <add>, %0, %cst [2] : vector<2x32x256xf32> to vector<2x32xf32>
    %cst_2 = arith.constant 3.906250e-03 : f32
    %2 = vector.broadcast %cst_2 : f32 to vector<2x32xf32>
    %3 = arith.mulf %1, %2 : vector<2x32xf32>
    %4 = vector.shape_cast %3 : vector<2x32xf32> to vector<2x1x32xf32>
    %c0_3 = arith.constant 0 : index
    %c0_4 = arith.constant 0 : index
    %c0_5 = arith.constant 0 : index
    %5 = vector.load %arg2[%c0_3, %c0_4, %c0_5] : memref<2x1x32xf32, #tpu.memory_space<vmem>>, vector<2x1x32xf32>
    tpu.vector_store %arg2[%c0_3, %c0_4, %c0_5], %4 {strides = array<i32>} : memref<2x1x32xf32, #tpu.memory_space<vmem>>, vector<2x1x32xf32>,
    %cst_6 = arith.constant dense<0xFF800000> : vector<2x32xf32>
    %6 = vector.multi_reduction <maximumf>, %0, %cst_6 [2] : vector<2x32x256xf32> to vector<2x32xf32>
    %7 = vector.shape_cast %6 : vector<2x32xf32> to vector<2x1x32xf32>
    %c0_7 = arith.constant 0 : index
    %c0_8 = arith.constant 0 : index
    %c0_9 = arith.constant 0 : index
    %8 = vector.load %arg3[%c0_7, %c0_8, %c0_9] : memref<2x1x32xf32, #tpu.memory_space<vmem>>, vector<2x1x32xf32>
    tpu.vector_store %arg3[%c0_7, %c0_8, %c0_9], %7 {strides = array<i32>} : memref<2x1x32xf32, #tpu.memory_space<vmem>>, vector<2x1x32xf32>,
    return
  }
  func.func @transform_0(%arg0: i32) -> (i32, i32, i32) {
    %c0_i32 = arith.constant 0 : i32
    %c0_i32_0 = arith.constant 0 : i32
    %c0_i32_1 = arith.constant 0 : i32
    return %arg0, %c0_i32, %c0_i32_0 : i32, i32, i32
  }
  func.func @transform_1(%arg0: i32) -> (i32, i32, i32) {
    %c0_i32 = arith.constant 0 : i32
    %c0_i32_0 = arith.constant 0 : i32
    %c0_i32_1 = arith.constant 0 : i32
    return %arg0, %c0_i32, %c0_i32_0 : i32, i32, i32
  }
  func.func @transform_2(%arg0: i32) -> (i32, i32, i32) {
    %c0_i32 = arith.constant 0 : i32
    %c0_i32_0 = arith.constant 0 : i32
    %c0_i32_1 = arith.constant 0 : i32
    return %arg0, %c0_i32, %c0_i32_0 : i32, i32, i32
  }
}

</mosaic_0001>

<bundles_post_ra>
// kernel: tpu_custom_call.1
= control target key start
LH: loop header
LB: loop body
LE: loop exit
PB: predicated region body
PF: predicated region fallthrough
CT: control target
= control target key end

     0   :  { %8 = vsyncpa [#allocation3], 0  ;;  %s422_s0 = inlined_call_operand.hbm [shape: f32[2,32,256], index: 0, kind: input, shape index: {}]   ;;  %s423_s1 = inlined_call_operand.hbm [shape: f32[2,1,32], index: 1, kind: output, shape index: {0}]   ;;  %s424_s2 = inlined_call_operand.hbm [shape: f32[2,1,32], index: 2, kind: output, shape index: {1}]  }
   0x1   :  { %9 = vsyncpa [#allocation4], 0 }
   0x2   :  { %10 = vsyncpa [#allocation7], 0  ;;  %s318_s9 = smov [#allocation2]   ;;  %s246_s13 = scalar_lea.hbm %s422_s0, 2048 }
   0x3   :  { %s16_s10 = sshll.u32 %s318_s9, 4  ;;  %p247_p0 = scmp.ne.s32.totalorder %s422_s0, %s246_s13  ;;  %s17_s10 = int_to_ptr.vmem [resolvable:$true] %s16_s10 }
   0x4   :  { %p250_p1 = scmp.lt.u32.totalorder %s246_s13, %s422_s0 }
   0x6   :  { %p252_p2 = pnand %p250_p1, %p247_p0 }
   0x8   :  { %255 = shalt.err (!%p252_p2)
}
   0x9   :  { %s256_s18 = scalar_lea.vmem %s17_s10, 2048  ;;  %p261_p4 = scmp.lt.s32.totalorder %s17_s10, %s17_s10 }
   0xa   :  { %p257_p3 = scmp.ne.s32.totalorder %s17_s10, %s256_s18  ;;  %p262_p5 = scmp.lt.s32.totalorder %s256_s18, %s256_s18 }
   0xc   :  { %p263_p6 = por %p262_p5, %p261_p4 }
   0xe   :  { %p264_p7 = pnand %p263_p6, %p257_p3 }
  0x10   :  { %267 = shalt.err (!%p264_p7)
}
  0x11   :  { %s319_s19 = smov 256   ;;  %s320_s20 = smov 16  }
  0x12   :  { %22 = dma.hbm_to_vmem [thread:$0]  %s422_s0, 2048, %s17_s10, [#allocation3], %s319_s19, %s319_s19, %s320_s20  }
  0x13   :  { %312 = dma.done.wait [#allocation3], 2048  }
  0x14   :  { %313 = vsyncadd [#allocation3], 4294965248  ;;  %v34_v0 = vld [vmem:[#allocation2 + $0x40] sm:$0xff]  ;;  %v35_v1 = vld [vmem:[#allocation2 + $0x48] sm:$0xff]  ;;  %v82_v32 = vlaneseq  ;;  %vm93_vm0 = vcmask 130112   ;;  %vm100_vm1 = vcmask 195712  }
  0x15   :  { %v26_v2 = vld [vmem:[#allocation2] sm:$0xff]  ;;  %v54_v3 = vadd.f32 %v35_v1, %v34_v0  ;;  %v27_v4 = vld [vmem:[#allocation2 + $0x8] sm:$0xff]  ;;  %v36_v5 = vld [vmem:[#allocation2 + $0x50] sm:$0xff]  ;;  %v145_v27 = vmax.f32 %v34_v0, %v35_v1  ;;  %vm107_vm2 = vcmask 261312   ;;  %s321_s0 = smov [#allocation5]   ;;  %vm130_vm3 = vcmask 253952  }
  0x16   :  { %v37_v6 = vld [vmem:[#allocation2 + $0x58] sm:$0xff]  ;;  %v42_v7 = vadd.f32 %v27_v4, %v26_v2  ;;  %v28_v8 = vld [vmem:[#allocation2 + $0x10] sm:$0xff]  ;;  %v38_v12 = vld [vmem:[#allocation2 + $0x60] sm:$0xff]  ;;  %v133_v25 = vmax.f32 %v26_v2, %v27_v4  ;;  %v83_v34 = vand.u32 127, %v82_v32  ;;  %v85_v39 = vshrl.u32 %v82_v32, 7  ;;  %s212_s23 = sshll.u32 %s321_s0, 4  ;;  %s213_s23 = int_to_ptr.vmem [resolvable:$true] %s212_s23 }
  0x17   :  { %v29_v9 = vld [vmem:[#allocation2 + $0x18] sm:$0xff]  ;;  %55 = vadd.xlane.f32.xlu1 %v54_v3  ;;  %v57_v10 = vadd.f32 %v37_v6, %v36_v5  ;;  %v39_v13 = vld [vmem:[#allocation2 + $0x68] sm:$0xff]  ;;  %v30_v14 = vld [vmem:[#allocation2 + $0x20] sm:$0xff]  ;;  %v148_v26 = vmax.f32 %v36_v5, %v37_v6  ;;  %s268_s24 = scalar_lea.vmem %s213_s23, 32  ;;  %p273_p9 = scmp.lt.s32.totalorder %s213_s23, %s213_s23 }
  0x18   :  { %43 = vadd.xlane.f32.xlu0 %v42_v7  ;;  %v45_v11 = vadd.f32 %v29_v9, %v28_v8  ;;  %v31_v15 = vld [vmem:[#allocation2 + $0x28] sm:$0xff]  ;;  %v60_v16 = vadd.f32 %v39_v13, %v38_v12  ;;  %v40_v18 = vld [vmem:[#allocation2 + $0x70] sm:$0xff]  ;;  %v41_v19 = vld [vmem:[#allocation2 + $0x78] sm:$0xff]  ;;  %v136_v24 = vmax.f32 %v28_v8, %v29_v9  ;;  %v151_v28 = vmax.f32 %v38_v12, %v39_v13  ;;  %p269_p8 = scmp.ne.s32.totalorder %s213_s23, %s268_s24  ;;  %p274_p10 = scmp.lt.s32.totalorder %s268_s24, %s268_s24 }
  0x19   :  { %v48_v17 = vadd.f32 %v31_v15, %v30_v14  ;;  %v32_v20 = vld [vmem:[#allocation2 + $0x30] sm:$0xff]  ;;  %v33_v21 = vld [vmem:[#allocation2 + $0x38] sm:$0xff]  ;;  %v63_v22 = vadd.f32 %v41_v19, %v40_v18  ;;  %v139_v29 = vmax.f32 %v30_v14, %v31_v15  ;;  %v154_v30 = vmax.f32 %v40_v18, %v41_v19 }
  0x1a   :  { %v51_v23 = vadd.f32 %v33_v21, %v32_v20  ;;  %v142_v31 = vmax.f32 %v32_v20, %v33_v21  ;;  %v88_v36 = vadd.s32 4294967288, %v83_v34  ;;  %v95_v38 = vadd.s32 4294967280, %v83_v34  ;;  %p275_p11 = por %p274_p10, %p273_p9 }
  0x1b   :  { %58 = vadd.xlane.f32.xlu1 %v57_v10  ;;  %v102_v43 = vadd.s32 4294967272, %v83_v34  ;;  %v356_v47 = vsub.s32 %v83_v34, %v85_v39 }
  0x1c   :  { %46 = vadd.xlane.f32.xlu0 %v45_v11  ;;  %v352_v41 = vsub.s32 %v88_v36, %v85_v39  ;;  %v354_v45 = vsub.s32 %v95_v38, %v85_v39  ;;  %p276_p12 = pnand %p275_p11, %p269_p8 }
  0x1d   :  { %v359_v54 = vsub.s32 %v102_v43, %v85_v39 }
  0x1f   :  { %61 = vadd.xlane.f32.xlu1 %v60_v16 }
  0x20   :  { %49 = vadd.xlane.f32.xlu0 %v48_v17 }
  0x23   :  { %64 = vadd.xlane.f32.xlu1 %v63_v22 }
  0x24   :  { %52 = vadd.xlane.f32.xlu0 %v51_v23 }
  0x27   :  { %137 = vmax.xlane.f32.xlu1 %v136_v24 }
  0x28   :  { %134 = vmax.xlane.f32.xlu0 %v133_v25 }
  0x2b   :  { %149 = vmax.xlane.f32.xlu1 %v148_v26 }
  0x2c   :  { %146 = vmax.xlane.f32.xlu0 %v145_v27 }
  0x2f   :  { %152 = vmax.xlane.f32.xlu1 %v151_v28 }
  0x30   :  { %140 = vmax.xlane.f32.xlu0 %v139_v29 }
  0x33   :  { %155 = vmax.xlane.f32.xlu1 %v154_v30 }
  0x34   :  { %143 = vmax.xlane.f32.xlu0 %v142_v31 }
  0xa4   :  { %v56_v33 = vpop.xlane.xlu1 %55 }
  0xa5   :  { %v44_v35 = vpop.xlane.xlu0 %43  ;;  %v70_v48 = vmul.f32 0.00390625, %v56_v33 }
  0xa6   :  { %v66_v51 = vmul.f32 0.00390625, %v44_v35 }
  0xa7   :  { %v112_v58 = vrot.slane %v70_v48, %v356_v47 }
  0xa8   :  { %v59_v37 = vpop.xlane.xlu1 %58  ;;  %v87_v62 = vrot.slane %v66_v51, %v356_v47 }
  0xa9   :  { %v47_v40 = vpop.xlane.xlu0 %46  ;;  %v71_v42 = vmul.f32 0.00390625, %v59_v37 }
  0xaa   :  { %v67_v44 = vmul.f32 0.00390625, %v47_v40 }
  0xab   :  { %v116_v53 = vrot.slane %v71_v42, %v352_v41 }
  0xac   :  { %v62_v46 = vpop.xlane.xlu1 %61  ;;  %v92_v55 = vrot.slane %v67_v44, %v352_v41 }
  0xad   :  { %v72_v49 = vmul.f32 0.00390625, %v62_v46  ;;  %v50_v50 = vpop.xlane.xlu0 %49  ;;  %v117_v0 = vsel %vm93_vm0, %v116_v53, %v112_v58 }
  0xae   :  { %v68_v52 = vmul.f32 0.00390625, %v50_v50  ;;  %v94_v2 = vsel %vm93_vm0, %v92_v55, %v87_v62 }
  0xaf   :  { %v121_v56 = vrot.slane %v72_v49, %v354_v45 }
  0xb0   :  { %v65_v57 = vpop.xlane.xlu1 %64  ;;  %v99_v59 = vrot.slane %v68_v52, %v354_v45 }
  0xb1   :  { %v73_v60 = vmul.f32 0.00390625, %v65_v57  ;;  %v53_v61 = vpop.xlane.xlu0 %52  ;;  %v122_v3 = vsel %vm100_vm1, %v121_v56, %v117_v0 }
  0xb2   :  { %v69_v63 = vmul.f32 0.00390625, %v53_v61  ;;  %v101_v6 = vsel %vm100_vm1, %v99_v59, %v94_v2 }
  0xb3   :  { %v126_v1 = vrot.slane %v73_v60, %v359_v54 }
  0xb4   :  { %v106_v4 = vrot.slane %v69_v63, %v359_v54  ;;  %v138_v5 = vpop.xlane.xlu1 %137 }
  0xb5   :  { %v127_v7 = vsel %vm107_vm2, %v126_v1, %v122_v3  ;;  %v135_v8 = vpop.xlane.xlu0 %134 }
  0xb6   :  { %v108_v9 = vsel %vm107_vm2, %v106_v4, %v101_v6  ;;  %132 = vst.msk [vmem:[#allocation5 + $0x1] sm:$0x1] %vm130_vm3, %v127_v7 }
  0xb7   :  { %131 = vst.msk [vmem:[#allocation5] sm:$0x1] %vm130_vm3, %v108_v9 }
  0xb8   :  { %v150_v10 = vpop.xlane.xlu1 %149 }
  0xb9   :  { %279 = shalt.err (!%p276_p12)
}
  0xba   :  { %s280_s27 = scalar_lea.hbm %s423_s1, 32 }
  0xbb   :  { %p281_p13 = scmp.ne.s32.totalorder %s423_s1, %s280_s27  ;;  %p284_p0 = scmp.lt.u32.totalorder %s280_s27, %s423_s1 }
  0xbd   :  { %p286_p1 = pnand %p284_p0, %p281_p13 }
  0xbf   :  { %289 = shalt.err (!%p286_p1)
}
  0xc0   :  { %s322_s4 = smov 1   ;;  %v147_v11 = vpop.xlane.xlu0 %146  ;;  %v153_v12 = vpop.xlane.xlu1 %152  ;;  %v191_v13 = vrot.slane %v150_v10, %v352_v41  ;;  %v172_v16 = vrot.slane %v138_v5, %v352_v41  ;;  %v168_v17 = vrot.slane %v135_v8, %v356_v47  ;;  %s323_s7 = smov [#allocation6]  }
  0xc1   :  { %218 = dma.vmem_to_hbm [thread:$0]  %s213_s23, 32, %s423_s1, [#allocation4], %s320_s20, %s320_s20, %s322_s4   ;;  %v187_v14 = vrot.slane %v147_v11, %v356_v47  ;;  %v196_v18 = vrot.slane %v153_v12, %v354_v45 }
  0xc2   :  { %s224_s8 = sshll.u32 %s323_s7, 4  ;;  %v173_v24 = vsel %vm93_vm0, %v172_v16, %v168_v17  ;;  %s225_s8 = int_to_ptr.vmem [resolvable:$true] %s224_s8 }
  0xc3   :  { %v192_v21 = vsel %vm93_vm0, %v191_v13, %v187_v14  ;;  %s290_s1 = scalar_lea.vmem %s225_s8, 32  ;;  %p295_p3 = scmp.lt.s32.totalorder %s225_s8, %s225_s8 }
  0xc4   :  { %v141_v15 = vpop.xlane.xlu0 %140  ;;  %v156_v20 = vpop.xlane.xlu1 %155  ;;  %v197_v25 = vsel %vm100_vm1, %v196_v18, %v192_v21  ;;  %p291_p2 = scmp.ne.s32.totalorder %s225_s8, %s290_s1  ;;  %p296_p4 = scmp.lt.s32.totalorder %s290_s1, %s290_s1 }
  0xc5   :  { %v177_v19 = vrot.slane %v141_v15, %v354_v45  ;;  %v201_v22 = vrot.slane %v156_v20, %v359_v54 }
  0xc6   :  { %p297_p5 = por %p296_p4, %p295_p3 }
  0xc7   :  { %v178_v27 = vsel %vm100_vm1, %v177_v19, %v173_v24  ;;  %v202_v28 = vsel %vm107_vm2, %v201_v22, %v197_v25 }
  0xc8   :  { %v144_v23 = vpop.xlane.xlu0 %143  ;;  %206 = vst.msk [vmem:[#allocation6 + $0x1] sm:$0x1] %vm130_vm3, %v202_v28  ;;  %p298_p6 = pnand %p297_p5, %p291_p2 }
  0xc9   :  { %v182_v26 = vrot.slane %v144_v23, %v359_v54 }
  0xcb   :  { %v183_v29 = vsel %vm107_vm2, %v182_v26, %v178_v27 }
  0xcc   :  { %205 = vst.msk [vmem:[#allocation6] sm:$0x1] %vm130_vm3, %v183_v29 }
  0xcd   :  { %301 = shalt.err (!%p298_p6)
}
  0xce   :  { %s302_s11 = scalar_lea.hbm %s424_s2, 32 }
  0xcf   :  { %p303_p7 = scmp.ne.s32.totalorder %s424_s2, %s302_s11  ;;  %p306_p8 = scmp.lt.u32.totalorder %s302_s11, %s424_s2 }
  0xd1   :  { %p308_p9 = pnand %p306_p8, %p303_p7 }
  0xd3   :  { %311 = shalt.err (!%p308_p9)
}
  0xd4   :  { %230 = dma.vmem_to_hbm [thread:$0]  %s225_s8, 32, %s424_s2, [#allocation7], %s320_s20, %s320_s20, %s322_s4  }
  0xd5   :  { %314 = dma.done.wait [#allocation4], 32  }
  0xd6   :  { %315 = vsyncadd [#allocation4], 4294967264 }
  0xd7   :  { %316 = dma.done.wait [#allocation7], 32  }
  0xd8   :  { %317 = vsyncadd [#allocation7], 4294967264 }
  0xd9   :  { %237 = vsyncpa [#allocation3], 1 }
  0xda   :  { %238 = vsyncpa [#allocation4], 1 }
  0xdb   :  { %239 = vsyncpa [#allocation7], 1 }

</bundles_post_ra>
